<compile_context>
chip_gen: v6e
topology: v6e:2x2x1
jax: 0.10.0
libtpu: 0.0.40
codegen_flags: <defaults>
</compile_context>

<pallas_src>
import functools
import math

import jax
import jax.numpy as jnp
from jax.experimental import pallas as pl
from jax.experimental.pallas import tpu as pltpu


_NEG_LARGE = -1e30  # "masked" T value: exp() underflows to 0 and never wins a max


# ---------------------------------------------------------------------------
# Fused kernel: encoder layer-1 + folded stats-net first layer + dual MINE
# energy losses, with online (max, sum-exp) logsumexp across batch tiles.
# ---------------------------------------------------------------------------
def _fused_dual_mine_kernel(
    inv_n,
    # streamed per-tile inputs
    x_ref, lab_ref,
    # resident weights / biases
    ew1_ref, eb1_ref, wst_ref, bst_ref, wyu_ref, wyp_ref, w2s_ref, b2s_ref,
    # output
    loss_ref,
    # VMEM accumulators (persist across grid steps)
    sum_hj_ref, m_ref, se_ref,
):
    step = pl.program_id(0)

    @pl.when(step == 0)
    def _init():
        sum_hj_ref[...] = jnp.zeros_like(sum_hj_ref)
        m_ref[...] = jnp.full_like(m_ref, _NEG_LARGE)
        se_ref[...] = jnp.zeros_like(se_ref)

    # Encoder layer 1 (bf16 MXU operands, f32 accumulation) + ReLU.
    h1 = jnp.maximum(
        jnp.dot(x_ref[...], ew1_ref[...], preferred_element_type=jnp.float32)
        + eb1_ref[...], 0.0)                                              # (TB, H_ENC) f32

    # Folded (encoder layer 2 ∘ stats-net first layer), both estimators stacked on lanes.
    xw = jnp.dot(h1.astype(jnp.bfloat16), wst_ref[...],
                 preferred_element_type=jnp.float32) + bst_ref[...]       # (TB, 2H) f32

    lab = lab_ref[...]               # (TB, 5) = [l1_joint | l2_joint | l1_marg | l2_marg | valid]
    valid = lab[:, 4:5] > 0.5        # (TB, 1) bool; padded rows are 0
    wyu = wyu_ref[...]               # (1, 2H): wy_util in util half, zeros elsewhere
    wyp = wyp_ref[...]               # (1, 2H): wy_priv in priv half, zeros elsewhere

    # Label contribution via VPU broadcast multiply (replaces two K=1 matmuls).
    h_joint = jnp.maximum(xw + lab[:, 0:1] * wyu + lab[:, 1:2] * wyp, 0.0)   # (TB, 2H)
    h_marg = jnp.maximum(xw + lab[:, 2:3] * wyu + lab[:, 3:4] * wyp, 0.0)    # (TB, 2H)

    # Block-diagonal second layer -> per-sample [T_util, T_priv] for the marginal term.
    # TODO(synk): if a bundle dump shows MXU is the binding slot, replace this N=2 matmul
    # with a VPU broadcast-multiply + XLU tree reduction over each 64-lane half.
    t_marg = (jnp.dot(h_marg.astype(jnp.bfloat16),
                      w2s_ref[...].astype(jnp.bfloat16),
                      preferred_element_type=jnp.float32) + b2s_ref[...])    # (TB, 2)

    # Mask padded rows out of both reductions.
    h_joint = jnp.where(valid, h_joint, 0.0)
    t_marg = jnp.where(valid, t_marg, _NEG_LARGE)

    # Joint term: second layer is linear, so only sum(h_joint) needs accumulating.
    sum_hj_ref[...] += jnp.sum(h_joint, axis=0, keepdims=True)               # (1, 2H)

    # Marginal term: online (max, sum-exp) logsumexp across tiles.
    tile_max = jnp.max(t_marg, axis=0, keepdims=True)                        # (1, 2)
    new_m = jnp.maximum(m_ref[...], tile_max)
    se_ref[...] = (se_ref[...] * jnp.exp(m_ref[...] - new_m)
                   + jnp.sum(jnp.exp(t_marg - new_m), axis=0, keepdims=True))
    m_ref[...] = new_m

    @pl.when(step == pl.num_programs(0) - 1)
    def _finalize():
        mean_h_joint = sum_hj_ref[...] * inv_n                               # (1, 2H) f32
        # Tiny (1,2H)@(2H,2) once per call; kept in f32 (no bf16 cast of the batch mean).
        mean_t_joint = (jnp.dot(mean_h_joint, w2s_ref[...],
                                preferred_element_type=jnp.float32)
                        + b2s_ref[...])                                      # (1, 2)
        log_mean_exp_marg = jnp.log(se_ref[...] * inv_n) + m_ref[...]        # (1, 2)
        # energy_loss = -(mean T_joint - log mean exp T_marg) = -mi
        loss_ref[...] = -(mean_t_joint - log_mean_exp_marg)


# ---------------------------------------------------------------------------
# Host-side wrapper reproducing DualOptimizationEncoder.forward(
#   num_batches_final_MI=1, include_privacy=True, include_utility=True)
# with mine_batch_size == len(dataset).
# ---------------------------------------------------------------------------
def _round_up(x, m):
    return ((x + m - 1) // m) * m


def _vmem_limit_bytes(tb, d_in, h_enc, h2):
    lane = 128
    pad = lambda c: _round_up(c, lane)
    x_stream = 2 * tb * pad(d_in) * 2            # bf16 x tile, double buffered
    lab_stream = 2 * tb * pad(5) * 4             # f32 merged-label tile, double buffered
    inter = tb * (pad(h_enc) + 3 * pad(h2)) * 4  # h1, xw, h_joint, h_marg (f32) temporaries
    resident = 4 * 1024 * 1024                   # weights, biases, accumulators, headroom
    total = x_stream + lab_stream + inter + resident
    # Keep at least the scoped default; stay under v7x's 64 MiB physical VMEM.
    return int(min(max(total, 32 * 1024 * 1024), 64 * 1024 * 1024))


def dual_optimization_forward(embeddings, label1, label2,
                              enc_params, util_params, priv_params, perm_key,
                              *, tile_rows=4096):
    """Returns (last_mi_utility, last_mi_privacy)."""
    n, d_in = embeddings.shape
    ew1, eb1, ew2, eb2 = enc_params
    wx_u, wy_u, b1_u, w2_u, b2_u = util_params
    wx_p, wy_p, b1_p, w2_p, b2_p = priv_params
    h_enc = ew1.shape[1]
    h_st = wx_u.shape[1]
    h2 = 2 * h_st                     # stacked stats-net hidden width (128 -> lane dense)

    # Product-of-marginals samples: labels shuffled by fixed host-side permutations
    # (stands in for the DataLoader shuffle inside the MINE energy loss).
    perm_u, perm_p = jax.random.split(perm_key)
    l1_marg = label1[jax.random.permutation(perm_u, n)]
    l2_marg = label2[jax.random.permutation(perm_p, n)]

    # Fold encoder layer 2 into the stacked stats-net first layer (exact, f32 on host).
    wx_s = jnp.concatenate([wx_u, wx_p], axis=1)                          # (D_OUT, 2H) f32
    w_st = (ew2 @ wx_s).astype(jnp.bfloat16)                              # (H_ENC, 2H)
    b_st = eb2 @ wx_s + jnp.concatenate([b1_u, b1_p], axis=1)             # (1, 2H) f32

    wyu_full = jnp.concatenate([wy_u, jnp.zeros_like(wy_p)], axis=1)      # (1, 2H) f32
    wyp_full = jnp.concatenate([jnp.zeros_like(wy_u), wy_p], axis=1)      # (1, 2H) f32
    zcol = jnp.zeros((h_st, 1), jnp.float32)
    w2_s = jnp.concatenate(
        [jnp.concatenate([w2_u, zcol], axis=0),
         jnp.concatenate([zcol, w2_p], axis=0)], axis=1)                  # (2H, 2) f32 block-diag
    b2_s = jnp.concatenate([b2_u, b2_p], axis=1)                          # (1, 2) f32

    # Batch tiling: whole-dataset MINE batch streamed through a 1-D grid; ragged sizes
    # are zero-padded and masked inside the kernel via the validity column.
    tb = _round_up(min(int(tile_rows), _round_up(n, 8)), 8)
    n_pad = _round_up(n, tb)
    num_tiles = n_pad // tb
    pad_rows = n_pad - n

    x_b = jnp.pad(embeddings.astype(jnp.bfloat16), ((0, pad_rows), (0, 0)))
    labels = jnp.concatenate([label1, label2, l1_marg, l2_marg],
                             axis=1).astype(jnp.float32)                  # (N, 4)
    labels = jnp.pad(labels, ((0, pad_rows), (0, 0)))
    valid_col = (jnp.arange(n_pad) < n).astype(jnp.float32)[:, None]      # (n_pad, 1)
    labels = jnp.concatenate([labels, valid_col], axis=1)                 # (n_pad, 5)

    ew1_b = ew1.astype(jnp.bfloat16)

    kernel = functools.partial(_fused_dual_mine_kernel, 1.0 / float(n))

    in_specs = [
        pl.BlockSpec((tb, d_in), lambda i: (i, 0)),       # x       (tiled over batch)
        pl.BlockSpec((tb, 5), lambda i: (i, 0)),          # labels  (tiled over batch)
        pl.BlockSpec((d_in, h_enc), lambda i: (0, 0)),    # ew1
        pl.BlockSpec((1, h_enc), lambda i: (0, 0)),       # eb1
        pl.BlockSpec((h_enc, h2), lambda i: (0, 0)),      # W_st (ew2 folded into [wx|wx])
        pl.BlockSpec((1, h2), lambda i: (0, 0)),          # b_st
        pl.BlockSpec((1, h2), lambda i: (0, 0)),          # wy_util (zero-padded to 2H)
        pl.BlockSpec((1, h2), lambda i: (0, 0)),          # wy_priv (zero-padded to 2H)
        pl.BlockSpec((h2, 2), lambda i: (0, 0)),          # w2_s (block diagonal)
        pl.BlockSpec((1, 2), lambda i: (0, 0)),           # b2_s
    ]
    out_specs = pl.BlockSpec((1, 2), lambda i: (0, 0))

    # TODO(synk): on v7x, split the batch grid across the two TensorCores (leading
    # parallel/core axis with per-core partial (sum, max, sum-exp) outputs combined
    # outside the kernel); the single-core online reduction here must stay "arbitrary".
    # TODO(synk): on v5e consider pipeline_mode=pl.Buffered(3) on the two streamed
    # inputs and tile_rows <= 2048 (16 MiB scoped-VMEM default).
    losses = pl.pallas_call(
        kernel,
        out_shape=jax.ShapeDtypeStruct((1, 2), jnp.float32),
        grid_spec=pltpu.PrefetchScalarGridSpec(
            num_scalar_prefetch=0,
            grid=(num_tiles,),
            in_specs=in_specs,
            out_specs=out_specs,
            scratch_shapes=[
                pltpu.VMEM((1, h2), jnp.float32),   # running sum of h_joint over batch
                pltpu.VMEM((1, 2), jnp.float32),    # running max of T_marg
                pltpu.VMEM((1, 2), jnp.float32),    # running sum of exp(T_marg - max)
            ],
        ),
        compiler_params=pltpu.CompilerParams(
            dimension_semantics=("arbitrary",),
            vmem_limit_bytes=_vmem_limit_bytes(tb, d_in, h_enc, h2),
        ),
    )(x_b, labels, ew1_b, eb1, w_st, b_st, wyu_full, wyp_full, w2_s, b2_s)

    # energy_loss = -mi ; last_mi = -1 * sum(energy_loss) / num_batches_final_MI (= 1)
    num_batches_final_MI = 1
    last_mi_utility = -1.0 * losses[0, 0] / num_batches_final_MI
    last_mi_privacy = -1.0 * losses[0, 1] / num_batches_final_MI
    return last_mi_utility, last_mi_privacy


# ---------------------------------------------------------------------------
# Pure-JAX f32 reference (same label permutations) for a correctness check.
# ---------------------------------------------------------------------------
def _reference_forward(embeddings, label1, label2,
                       enc_params, util_params, priv_params, perm_key):
    ew1, eb1, ew2, eb2 = enc_params
    n = embeddings.shape[0]
    tx = jnp.maximum(embeddings @ ew1 + eb1, 0.0) @ ew2 + eb2
    perm_u, perm_p = jax.random.split(perm_key)
    l1_m = label1[jax.random.permutation(perm_u, n)]
    l2_m = label2[jax.random.permutation(perm_p, n)]

    def mine_mi(y_joint, y_marg, params):
        wx, wy, b1, w2, b2 = params
        t_j = jnp.maximum(tx @ wx + y_joint @ wy + b1, 0.0) @ w2 + b2
        t_m = jnp.maximum(tx @ wx + y_marg @ wy + b1, 0.0) @ w2 + b2
        return jnp.mean(t_j) - jnp.log(jnp.mean(jnp.exp(t_m)))

    return (mine_mi(label1, l1_m, util_params),
            mine_mi(label2, l2_m, priv_params))


if __name__ == "__main__":
    # Small synthetic shapes; N not a multiple of the tile exercises the ragged/mask path.
    N, D_IN, H_ENC, D_OUT, H_ST = 130, 32, 64, 16, 64

    key = jax.random.PRNGKey(0)
    (k_emb, k_l1, k_l2, k_ew1, k_eb1, k_ew2, k_eb2,
     k_uwx, k_uwy, k_ub1, k_uw2, k_ub2,
     k_pwx, k_pwy, k_pb1, k_pw2, k_pb2, k_perm) = jax.random.split(key, 18)

    embeddings = jax.random.normal(k_emb, (N, D_IN), jnp.float32)
    label1 = jax.random.bernoulli(k_l1, 0.5, (N, 1)).astype(jnp.float32)  # public / utility
    label2 = jax.random.bernoulli(k_l2, 0.5, (N, 1)).astype(jnp.float32)  # private

    # Encoder: Linear(D_IN, H_ENC) -> ReLU -> Linear(H_ENC, D_OUT)
    enc_params = (
        jax.random.normal(k_ew1, (D_IN, H_ENC), jnp.float32) / math.sqrt(D_IN),
        0.1 * jax.random.normal(k_eb1, (1, H_ENC), jnp.float32),
        jax.random.normal(k_ew2, (H_ENC, D_OUT), jnp.float32) / math.sqrt(H_ENC),
        0.1 * jax.random.normal(k_eb2, (1, D_OUT), jnp.float32),
    )

    def make_stats_params(kx, ky, kb1, k2, kb2):
        # StatsNet: Linear(D_OUT + 1, H_ST) -> ReLU -> Linear(H_ST, 1); first layer split
        # into the T(x) part (wx) and the label part (wy).
        return (
            jax.random.normal(kx, (D_OUT, H_ST), jnp.float32) / math.sqrt(D_OUT + 1),
            jax.random.normal(ky, (1, H_ST), jnp.float32) / math.sqrt(D_OUT + 1),
            0.1 * jax.random.normal(kb1, (1, H_ST), jnp.float32),
            jax.random.normal(k2, (H_ST, 1), jnp.float32) / math.sqrt(H_ST),
            0.1 * jax.random.normal(kb2, (1, 1), jnp.float32),
        )

    util_params = make_stats_params(k_uwx, k_uwy, k_ub1, k_uw2, k_ub2)
    priv_params = make_stats_params(k_pwx, k_pwy, k_pb1, k_pw2, k_pb2)

    mi_utility, mi_privacy = dual_optimization_forward(
        embeddings, label1, label2, enc_params, util_params, priv_params, k_perm,
        tile_rows=64,   # small tile -> multi-step grid + ragged last tile in this demo
    )
    jax.block_until_ready((mi_utility, mi_privacy))

    ref_u, ref_p = _reference_forward(
        embeddings, label1, label2, enc_params, util_params, priv_params, k_perm)
    assert abs(float(mi_utility) - float(ref_u)) < 0.1, (float(mi_utility), float(ref_u))
    assert abs(float(mi_privacy) - float(ref_p)) < 0.1, (float(mi_privacy), float(ref_p))

    print("KERNEL_OK")
</pallas_src>

<mosaic_0001>
module attributes {stable_mosaic.version = 11 : i64} {
  func.func @_fused_dual_mine_kernel(%arg0: i32, %arg1: memref<64x32xbf16, #tpu.memory_space<vmem>>, %arg2: memref<64x5xf32, #tpu.memory_space<vmem>>, %arg3: memref<32x64xbf16, #tpu.memory_space<vmem>>, %arg4: memref<1x64xf32, #tpu.memory_space<vmem>>, %arg5: memref<64x128xbf16, #tpu.memory_space<vmem>>, %arg6: memref<1x128xf32, #tpu.memory_space<vmem>>, %arg7: memref<1x128xf32, #tpu.memory_space<vmem>>, %arg8: memref<1x128xf32, #tpu.memory_space<vmem>>, %arg9: memref<128x2xf32, #tpu.memory_space<vmem>>, %arg10: memref<1x2xf32, #tpu.memory_space<vmem>>, %arg11: memref<1x2xf32, #tpu.memory_space<vmem>>, %arg12: memref<1x128xf32, #tpu.memory_space<vmem>>, %arg13: memref<1x2xf32, #tpu.memory_space<vmem>>, %arg14: memref<1x2xf32, #tpu.memory_space<vmem>>) attributes {dimension_semantics = [#tpu.dimension_semantics<arbitrary>], iteration_bounds = array<i64: 3>, scalar_prefetch = 0 : i64, scratch_operands = 3 : i64, tpu.core_type = #tpu.core_type<tc>, window_params = [{transform_indices = @transform_0, window_bounds = array<i64: 64, 32>}, {transform_indices = @transform_1, window_bounds = array<i64: 64, 5>}, {pipeline_mode = #tpu.pipeline_mode<synchronous>, transform_indices = @transform_2, window_bounds = array<i64: 32, 64>}, {pipeline_mode = #tpu.pipeline_mode<synchronous>, transform_indices = @transform_3, window_bounds = array<i64: 1, 64>}, {pipeline_mode = #tpu.pipeline_mode<synchronous>, transform_indices = @transform_4, window_bounds = array<i64: 64, 128>}, {pipeline_mode = #tpu.pipeline_mode<synchronous>, transform_indices = @transform_5, window_bounds = array<i64: 1, 128>}, {pipeline_mode = #tpu.pipeline_mode<synchronous>, transform_indices = @transform_6, window_bounds = array<i64: 1, 128>}, {pipeline_mode = #tpu.pipeline_mode<synchronous>, transform_indices = @transform_7, window_bounds = array<i64: 1, 128>}, {pipeline_mode = #tpu.pipeline_mode<synchronous>, transform_indices = @transform_8, window_bounds = array<i64: 128, 2>}, {pipeline_mode = #tpu.pipeline_mode<synchronous>, transform_indices = @transform_9, window_bounds = array<i64: 1, 2>}, {pipeline_mode = #tpu.pipeline_mode<synchronous>, transform_indices = @transform_10, window_bounds = array<i64: 1, 2>}]} {
    %c0_i32 = arith.constant 0 : i32
    %0 = arith.cmpi eq, %arg0, %c0_i32 : i32
    %1 = arith.extui %0 : i1 to i32
    %c0_i32_0 = arith.constant 0 : i32
    %2 = arith.cmpi ne, %1, %c0_i32_0 : i32
    scf.if %2 {
      %cst_46 = arith.constant 0.000000e+00 : f32
      %87 = vector.broadcast %cst_46 : f32 to vector<1x128xf32>
      %c0_47 = arith.constant 0 : index
      %c0_48 = arith.constant 0 : index
      %88 = vector.load %arg12[%c0_47, %c0_48] : memref<1x128xf32, #tpu.memory_space<vmem>>, vector<1x128xf32>
      tpu.vector_store %arg12[%c0_47, %c0_48], %87 {strides = array<i32>} : memref<1x128xf32, #tpu.memory_space<vmem>>, vector<1x128xf32>,
      %cst_49 = arith.constant -1.000000e+30 : f32
      %89 = vector.broadcast %cst_49 : f32 to vector<1x2xf32>
      %c0_50 = arith.constant 0 : index
      %c0_51 = arith.constant 0 : index
      %90 = vector.load %arg13[%c0_50, %c0_51] : memref<1x2xf32, #tpu.memory_space<vmem>>, vector<1x2xf32>
      tpu.vector_store %arg13[%c0_50, %c0_51], %89 {strides = array<i32>} : memref<1x2xf32, #tpu.memory_space<vmem>>, vector<1x2xf32>,
      %cst_52 = arith.constant 0.000000e+00 : f32
      %91 = vector.broadcast %cst_52 : f32 to vector<1x2xf32>
      %c0_53 = arith.constant 0 : index
      %c0_54 = arith.constant 0 : index
      %92 = vector.load %arg14[%c0_53, %c0_54] : memref<1x2xf32, #tpu.memory_space<vmem>>, vector<1x2xf32>
      tpu.vector_store %arg14[%c0_53, %c0_54], %91 {strides = array<i32>} : memref<1x2xf32, #tpu.memory_space<vmem>>, vector<1x2xf32>,
    } else {
    }
    %c0 = arith.constant 0 : index
    %c0_1 = arith.constant 0 : index
    %3 = vector.load %arg1[%c0, %c0_1] : memref<64x32xbf16, #tpu.memory_space<vmem>>, vector<64x32xbf16>
    %c0_2 = arith.constant 0 : index
    %c0_3 = arith.constant 0 : index
    %4 = vector.load %arg3[%c0_2, %c0_3] : memref<32x64xbf16, #tpu.memory_space<vmem>>, vector<32x64xbf16>
    %cst = arith.constant dense<0.000000e+00> : vector<64x64xf32>
    %5 = tpu.matmul %3, %4, %cst {dimension_numbers = #tpu.dot_dimension_numbers<[1], [0], [0], [1], [0, 0, 1, 1], [], []>} : vector<64x32xbf16>, vector<32x64xbf16>, vector<64x64xf32> -> vector<64x64xf32>
    %c0_4 = arith.constant 0 : index
    %c0_5 = arith.constant 0 : index
    %6 = vector.load %arg4[%c0_4, %c0_5] : memref<1x64xf32, #tpu.memory_space<vmem>>, vector<1x64xf32>
    %7 = vector.broadcast %6 : vector<1x64xf32> to vector<64x64xf32>
    %8 = arith.addf %5, %7 : vector<64x64xf32>
    %cst_6 = arith.constant 0.000000e+00 : f32
    %9 = vector.broadcast %cst_6 : f32 to vector<64x64xf32>
    %10 = arith.maximumf %8, %9 : vector<64x64xf32>
    %11 = arith.truncf %10 : vector<64x64xf32> to vector<64x64xbf16>
    %c0_7 = arith.constant 0 : index
    %c0_8 = arith.constant 0 : index
    %12 = vector.load %arg5[%c0_7, %c0_8] : memref<64x128xbf16, #tpu.memory_space<vmem>>, vector<64x128xbf16>
    %cst_9 = arith.constant dense<0.000000e+00> : vector<64x128xf32>
    %13 = tpu.matmul %11, %12, %cst_9 {dimension_numbers = #tpu.dot_dimension_numbers<[1], [0], [0], [1], [0, 0, 1, 1], [], []>} : vector<64x64xbf16>, vector<64x128xbf16>, vector<64x128xf32> -> vector<64x128xf32>
    %c0_10 = arith.constant 0 : index
    %c0_11 = arith.constant 0 : index
    %14 = vector.load %arg6[%c0_10, %c0_11] : memref<1x128xf32, #tpu.memory_space<vmem>>, vector<1x128xf32>
    %15 = vector.broadcast %14 : vector<1x128xf32> to vector<64x128xf32>
    %16 = arith.addf %13, %15 : vector<64x128xf32>
    %c0_12 = arith.constant 0 : index
    %c0_13 = arith.constant 0 : index
    %17 = vector.load %arg2[%c0_12, %c0_13] : memref<64x5xf32, #tpu.memory_space<vmem>>, vector<64x5xf32>
    %18 = vector.extract_strided_slice %17 {offsets = [0, 4], sizes = [64, 1], strides = [1, 1]} : vector<64x5xf32> to vector<64x1xf32>
    %cst_14 = arith.constant 5.000000e-01 : f32
    %19 = vector.broadcast %cst_14 : f32 to vector<64x1xf32>
    %20 = arith.cmpf ogt, %18, %19 : vector<64x1xf32>
    %c0_15 = arith.constant 0 : index
    %c0_16 = arith.constant 0 : index
    %21 = vector.load %arg7[%c0_15, %c0_16] : memref<1x128xf32, #tpu.memory_space<vmem>>, vector<1x128xf32>
    %c0_17 = arith.constant 0 : index
    %c0_18 = arith.constant 0 : index
    %22 = vector.load %arg8[%c0_17, %c0_18] : memref<1x128xf32, #tpu.memory_space<vmem>>, vector<1x128xf32>
    %23 = vector.extract_strided_slice %17 {offsets = [0, 0], sizes = [64, 1], strides = [1, 1]} : vector<64x5xf32> to vector<64x1xf32>
    %24 = vector.broadcast %23 : vector<64x1xf32> to vector<64x128xf32>
    %25 = vector.broadcast %21 : vector<1x128xf32> to vector<64x128xf32>
    %26 = arith.mulf %24, %25 : vector<64x128xf32>
    %27 = arith.addf %16, %26 : vector<64x128xf32>
    %28 = vector.extract_strided_slice %17 {offsets = [0, 1], sizes = [64, 1], strides = [1, 1]} : vector<64x5xf32> to vector<64x1xf32>
    %29 = vector.broadcast %28 : vector<64x1xf32> to vector<64x128xf32>
    %30 = vector.broadcast %22 : vector<1x128xf32> to vector<64x128xf32>
    %31 = arith.mulf %29, %30 : vector<64x128xf32>
    %32 = arith.addf %27, %31 : vector<64x128xf32>
    %cst_19 = arith.constant 0.000000e+00 : f32
    %33 = vector.broadcast %cst_19 : f32 to vector<64x128xf32>
    %34 = arith.maximumf %32, %33 : vector<64x128xf32>
    %35 = vector.extract_strided_slice %17 {offsets = [0, 2], sizes = [64, 1], strides = [1, 1]} : vector<64x5xf32> to vector<64x1xf32>
    %36 = vector.broadcast %35 : vector<64x1xf32> to vector<64x128xf32>
    %37 = vector.broadcast %21 : vector<1x128xf32> to vector<64x128xf32>
    %38 = arith.mulf %36, %37 : vector<64x128xf32>
    %39 = arith.addf %16, %38 : vector<64x128xf32>
    %40 = vector.extract_strided_slice %17 {offsets = [0, 3], sizes = [64, 1], strides = [1, 1]} : vector<64x5xf32> to vector<64x1xf32>
    %41 = vector.broadcast %40 : vector<64x1xf32> to vector<64x128xf32>
    %42 = vector.broadcast %22 : vector<1x128xf32> to vector<64x128xf32>
    %43 = arith.mulf %41, %42 : vector<64x128xf32>
    %44 = arith.addf %39, %43 : vector<64x128xf32>
    %cst_20 = arith.constant 0.000000e+00 : f32
    %45 = vector.broadcast %cst_20 : f32 to vector<64x128xf32>
    %46 = arith.maximumf %44, %45 : vector<64x128xf32>
    %47 = arith.truncf %46 : vector<64x128xf32> to vector<64x128xbf16>
    %c0_21 = arith.constant 0 : index
    %c0_22 = arith.constant 0 : index
    %48 = vector.load %arg9[%c0_21, %c0_22] : memref<128x2xf32, #tpu.memory_space<vmem>>, vector<128x2xf32>
    %49 = arith.truncf %48 : vector<128x2xf32> to vector<128x2xbf16>
    %cst_23 = arith.constant dense<0.000000e+00> : vector<64x2xf32>
    %50 = tpu.matmul %47, %49, %cst_23 {dimension_numbers = #tpu.dot_dimension_numbers<[1], [0], [0], [1], [0, 0, 1, 1], [], []>} : vector<64x128xbf16>, vector<128x2xbf16>, vector<64x2xf32> -> vector<64x2xf32>
    %c0_24 = arith.constant 0 : index
    %c0_25 = arith.constant 0 : index
    %51 = vector.load %arg10[%c0_24, %c0_25] : memref<1x2xf32, #tpu.memory_space<vmem>>, vector<1x2xf32>
    %52 = vector.broadcast %51 : vector<1x2xf32> to vector<64x2xf32>
    %53 = arith.addf %50, %52 : vector<64x2xf32>
    %cst_26 = arith.constant 0.000000e+00 : f32
    %54 = vector.shape_cast %20 : vector<64x1xi1> to vector<64x1xi1>
    %55 = vector.broadcast %54 : vector<64x1xi1> to vector<64x128xi1>
    %56 = vector.broadcast %cst_26 : f32 to vector<64x128xf32>
    %57 = arith.select %55, %34, %56 : vector<64x128xi1>, vector<64x128xf32>
    %cst_27 = arith.constant -1.000000e+30 : f32
    %58 = vector.shape_cast %20 : vector<64x1xi1> to vector<64x1xi1>
    %59 = vector.broadcast %58 : vector<64x1xi1> to vector<64x2xi1>
    %60 = vector.broadcast %cst_27 : f32 to vector<64x2xf32>
    %61 = arith.select %59, %53, %60 : vector<64x2xi1>, vector<64x2xf32>
    %c0_28 = arith.constant 0 : index
    %c0_29 = arith.constant 0 : index
    %62 = vector.load %arg12[%c0_28, %c0_29] : memref<1x128xf32, #tpu.memory_space<vmem>>, vector<1x128xf32>
    %cst_30 = arith.constant dense<0.000000e+00> : vector<128xf32>
    %63 = vector.multi_reduction <add>, %57, %cst_30 [0] : vector<64x128xf32> to vector<128xf32>
    %64 = vector.shape_cast %63 : vector<128xf32> to vector<1x128xf32>
    %65 = arith.addf %62, %64 : vector<1x128xf32>
    %c0_31 = arith.constant 0 : index
    %c0_32 = arith.constant 0 : index
    %66 = vector.load %arg12[%c0_31, %c0_32] : memref<1x128xf32, #tpu.memory_space<vmem>>, vector<1x128xf32>
    tpu.vector_store %arg12[%c0_31, %c0_32], %65 {strides = array<i32>} : memref<1x128xf32, #tpu.memory_space<vmem>>, vector<1x128xf32>,
    %cst_33 = arith.constant dense<0xFF800000> : vector<2xf32>
    %67 = vector.multi_reduction <maximumf>, %61, %cst_33 [0] : vector<64x2xf32> to vector<2xf32>
    %68 = vector.shape_cast %67 : vector<2xf32> to vector<1x2xf32>
    %c0_34 = arith.constant 0 : index
    %c0_35 = arith.constant 0 : index
    %69 = vector.load %arg13[%c0_34, %c0_35] : memref<1x2xf32, #tpu.memory_space<vmem>>, vector<1x2xf32>
    %70 = arith.maximumf %69, %68 : vector<1x2xf32>
    %c0_36 = arith.constant 0 : index
    %c0_37 = arith.constant 0 : index
    %71 = vector.load %arg14[%c0_36, %c0_37] : memref<1x2xf32, #tpu.memory_space<vmem>>, vector<1x2xf32>
    %c0_38 = arith.constant 0 : index
    %c0_39 = arith.constant 0 : index
    %72 = vector.load %arg13[%c0_38, %c0_39] : memref<1x2xf32, #tpu.memory_space<vmem>>, vector<1x2xf32>
    %73 = arith.subf %72, %70 : vector<1x2xf32>
    %74 = math.exp %73 : vector<1x2xf32>
    %75 = arith.mulf %71, %74 : vector<1x2xf32>
    %76 = vector.broadcast %70 : vector<1x2xf32> to vector<64x2xf32>
    %77 = arith.subf %61, %76 : vector<64x2xf32>
    %78 = math.exp %77 : vector<64x2xf32>
    %cst_40 = arith.constant dense<0.000000e+00> : vector<2xf32>
    %79 = vector.multi_reduction <add>, %78, %cst_40 [0] : vector<64x2xf32> to vector<2xf32>
    %80 = vector.shape_cast %79 : vector<2xf32> to vector<1x2xf32>
    %81 = arith.addf %75, %80 : vector<1x2xf32>
    %c0_41 = arith.constant 0 : index
    %c0_42 = arith.constant 0 : index
    %82 = vector.load %arg14[%c0_41, %c0_42] : memref<1x2xf32, #tpu.memory_space<vmem>>, vector<1x2xf32>
    tpu.vector_store %arg14[%c0_41, %c0_42], %81 {strides = array<i32>} : memref<1x2xf32, #tpu.memory_space<vmem>>, vector<1x2xf32>,
    %c0_43 = arith.constant 0 : index
    %c0_44 = arith.constant 0 : index
    %83 = vector.load %arg13[%c0_43, %c0_44] : memref<1x2xf32, #tpu.memory_space<vmem>>, vector<1x2xf32>
    tpu.vector_store %arg13[%c0_43, %c0_44], %70 {strides = array<i32>} : memref<1x2xf32, #tpu.memory_space<vmem>>, vector<1x2xf32>,
    %c2_i32 = arith.constant 2 : i32
    %84 = arith.cmpi eq, %arg0, %c2_i32 : i32
    %85 = arith.extui %84 : i1 to i32
    %c0_i32_45 = arith.constant 0 : i32
    %86 = arith.cmpi ne, %85, %c0_i32_45 : i32
    scf.if %86 {
      %c0_46 = arith.constant 0 : index
      %c0_47 = arith.constant 0 : index
      %87 = vector.load %arg12[%c0_46, %c0_47] : memref<1x128xf32, #tpu.memory_space<vmem>>, vector<1x128xf32>
      %cst_48 = arith.constant 0.0076923077 : f32
      %88 = vector.broadcast %cst_48 : f32 to vector<1x128xf32>
      %89 = arith.mulf %87, %88 : vector<1x128xf32>
      %c0_49 = arith.constant 0 : index
      %c0_50 = arith.constant 0 : index
      %90 = vector.load %arg9[%c0_49, %c0_50] : memref<128x2xf32, #tpu.memory_space<vmem>>, vector<128x2xf32>
      %cst_51 = arith.constant dense<0.000000e+00> : vector<1x2xf32>
      %91 = tpu.matmul %89, %90, %cst_51 {dimension_numbers = #tpu.dot_dimension_numbers<[1], [0], [0], [1], [0, 0, 1, 1], [], []>} : vector<1x128xf32>, vector<128x2xf32>, vector<1x2xf32> -> vector<1x2xf32>
      %c0_52 = arith.constant 0 : index
      %c0_53 = arith.constant 0 : index
      %92 = vector.load %arg10[%c0_52, %c0_53] : memref<1x2xf32, #tpu.memory_space<vmem>>, vector<1x2xf32>
      %93 = arith.addf %91, %92 : vector<1x2xf32>
      %c0_54 = arith.constant 0 : index
      %c0_55 = arith.constant 0 : index
      %94 = vector.load %arg14[%c0_54, %c0_55] : memref<1x2xf32, #tpu.memory_space<vmem>>, vector<1x2xf32>
      %cst_56 = arith.constant 0.0076923077 : f32
      %95 = vector.broadcast %cst_56 : f32 to vector<1x2xf32>
      %96 = arith.mulf %94, %95 : vector<1x2xf32>
      %97 = math.log %96 : vector<1x2xf32>
      %c0_57 = arith.constant 0 : index
      %c0_58 = arith.constant 0 : index
      %98 = vector.load %arg13[%c0_57, %c0_58] : memref<1x2xf32, #tpu.memory_space<vmem>>, vector<1x2xf32>
      %99 = arith.addf %97, %98 : vector<1x2xf32>
      %100 = arith.subf %93, %99 : vector<1x2xf32>
      %cst_59 = arith.constant 0.000000e+00 : f32
      %101 = vector.broadcast %cst_59 : f32 to vector<1x2xf32>
      %102 = arith.subf %101, %100 : vector<1x2xf32>
      %c0_60 = arith.constant 0 : index
      %c0_61 = arith.constant 0 : index
      %103 = vector.load %arg11[%c0_60, %c0_61] : memref<1x2xf32, #tpu.memory_space<vmem>>, vector<1x2xf32>
      tpu.vector_store %arg11[%c0_60, %c0_61], %102 {strides = array<i32>} : memref<1x2xf32, #tpu.memory_space<vmem>>, vector<1x2xf32>,
    } else {
    }
    return
  }
  func.func @transform_0(%arg0: i32) -> (i32, i32) {
    %c0_i32 = arith.constant 0 : i32
    %c0_i32_0 = arith.constant 0 : i32
    return %arg0, %c0_i32 : i32, i32
  }
  func.func @transform_1(%arg0: i32) -> (i32, i32) {
    %c0_i32 = arith.constant 0 : i32
    %c0_i32_0 = arith.constant 0 : i32
    return %arg0, %c0_i32 : i32, i32
  }
  func.func @transform_2(%arg0: i32) -> (i32, i32) {
    %c0_i32 = arith.constant 0 : i32
    %c0_i32_0 = arith.constant 0 : i32
    %c0_i32_1 = arith.constant 0 : i32
    return %c0_i32, %c0_i32_0 : i32, i32
  }
  func.func @transform_3(%arg0: i32) -> (i32, i32) {
    %c0_i32 = arith.constant 0 : i32
    %c0_i32_0 = arith.constant 0 : i32
    %c0_i32_1 = arith.constant 0 : i32
    return %c0_i32, %c0_i32_0 : i32, i32
  }
  func.func @transform_4(%arg0: i32) -> (i32, i32) {
    %c0_i32 = arith.constant 0 : i32
    %c0_i32_0 = arith.constant 0 : i32
    %c0_i32_1 = arith.constant 0 : i32
    return %c0_i32, %c0_i32_0 : i32, i32
  }
  func.func @transform_5(%arg0: i32) -> (i32, i32) {
    %c0_i32 = arith.constant 0 : i32
    %c0_i32_0 = arith.constant 0 : i32
    %c0_i32_1 = arith.constant 0 : i32
    return %c0_i32, %c0_i32_0 : i32, i32
  }
  func.func @transform_6(%arg0: i32) -> (i32, i32) {
    %c0_i32 = arith.constant 0 : i32
    %c0_i32_0 = arith.constant 0 : i32
    %c0_i32_1 = arith.constant 0 : i32
    return %c0_i32, %c0_i32_0 : i32, i32
  }
  func.func @transform_7(%arg0: i32) -> (i32, i32) {
    %c0_i32 = arith.constant 0 : i32
    %c0_i32_0 = arith.constant 0 : i32
    %c0_i32_1 = arith.constant 0 : i32
    return %c0_i32, %c0_i32_0 : i32, i32
  }
  func.func @transform_8(%arg0: i32) -> (i32, i32) {
    %c0_i32 = arith.constant 0 : i32
    %c0_i32_0 = arith.constant 0 : i32
    %c0_i32_1 = arith.constant 0 : i32
    return %c0_i32, %c0_i32_0 : i32, i32
  }
  func.func @transform_9(%arg0: i32) -> (i32, i32) {
    %c0_i32 = arith.constant 0 : i32
    %c0_i32_0 = arith.constant 0 : i32
    %c0_i32_1 = arith.constant 0 : i32
    return %c0_i32, %c0_i32_0 : i32, i32
  }
  func.func @transform_10(%arg0: i32) -> (i32, i32) {
    %c0_i32 = arith.constant 0 : i32
    %c0_i32_0 = arith.constant 0 : i32
    %c0_i32_1 = arith.constant 0 : i32
    return %c0_i32, %c0_i32_0 : i32, i32
  }
}

</mosaic_0001>

<bundles_post_ra>
// kernel: tpu_custom_call.1
= control target key start
LH: loop header
LB: loop body
LE: loop exit
PB: predicated region body
PF: predicated region fallthrough
CT: control target
= control target key end

     0   :  { %15 = vsyncpa [#allocation6], 0  ;;  %s1636_s13 = smov 0   ;;  %s2030_s0 = inlined_call_operand.vmem [shape: bf16[192,32], index: 0, kind: input, shape index: {}]   ;;  %s2031_s1 = inlined_call_operand.vmem [shape: f32[192,5], index: 1, kind: input, shape index: {}]   ;;  %s2032_s2 = inlined_call_operand.vmem [shape: bf16[32,64], index: 2, kind: input, shape index: {}]   ;;  %s2033_s3 = inlined_call_operand.vmem [shape: f32[1,64], index: 3, kind: input, shape index: {}]   ;;  %s2034_s4 = inlined_call_operand.vmem [shape: bf16[64,128], index: 4, kind: input, shape index: {}]   ;;  %s2035_s5 = inlined_call_operand.vmem [shape: f32[1,128], index: 5, kind: input, shape index: {}]   ;;  %s2036_s6 = inlined_call_operand.vmem [shape: f32[1,128], index: 6, kind: input, shape index: {}]   ;;  %s2037_s7 = inlined_call_operand.vmem [shape: f32[1,128], index: 7, kind: input, shape index: {}]   ;;  %s2038_s8 = inlined_call_operand.vmem [shape: f32[128,2], index: 8, kind: input, shape index: {}]   ;;  %s2039_s9 = inlined_call_operand.vmem [shape: f32[1,2], index: 9, kind: input, shape index: {}]   ;;  %s2040_s10 = inlined_call_operand.hbm [shape: f32[1,2], index: 10, kind: output, shape index: {}]  }
   0x1 LB: > { %s1642_s14 = sadd.s32 4294967295, %s1569_s13   ;;  %p1302_p0 = scmp.ge.s32.totalorder %s1569_s13, 1  ;;  %s1569_s13 = sphi %s1636_s13, %s21_s13  }
   0x2   : > { %p320_p1 = scmp.lt.s32.totalorder %s1569_s13, 4 }
   0x4   : > { %p321_p2 = pnand %p1302_p0, %p320_p1 }
   0x5   : > { %s1303_s15 = sshll.u32 (!%p321_p2), %s1642_s14, 3  ;;  %p1307_p4 = scmp.ne.s32.totalorder (!%p321_p2), %s1642_s14, 0 }
   0x6   : > { %324 = sbr.rel (%p321_p2) target bundleno = 975 (0x3cf), region = 60  ;;  %p359_p3 = scmp.lt.s32.totalorder (!%p321_p2), %s1303_s15, 23 }
   0xb   : > { %s2042_s15 = smov (!%p359_p3, %s1303_s15), 23  ;;  %374 = sbr.rel (%p1307_p4) target bundleno = 19 (0x13), region = 64 }
   0xc   : > { %s1304_s16 = sshll.u32 %s2042_s15, 2  ;;  %s1306_s17 = sshll.u32 %s2042_s15, 3 }
   0xd   : > { %s362_s20 = scalar_lea.vmem %s2030_s0, %s1304_s16  ;;  %s1653_s23 = scalar_lea.vmem %s2031_s1, %s1306_s17 }
  0x10   : > { %vm376_vm0 = vcmask 8192   ;;  %v1571_v0 = vmov 0.0   ;;  %v1572_v1 = vmov -1e+30  }
  0x11   : > { %375 = vst [vmem:[#allocation2] sm:$0x1] %v1571_v0  ;;  %377 = vst.msk [vmem:[#allocation3] sm:$0x1] %vm376_vm0, %v1572_v1 }
  0x12   : > { %378 = vst.msk [vmem:[#allocation4] sm:$0x1] %vm376_vm0, %v1571_v0 }
  0x13 PF: > { %v1505_v2 = vld [vmem:[%s2032_s2 + $0x8] sm:$0xff]   ;;  %vm430_vm1 = vcmask 261120   ;;  %v1506_v3 = vld [vmem:[%s2032_s2] sm:$0xff]   ;;  %v1573_v5 = vmov 2   ;;  %v1509_v7 = vld [vmem:[%s362_s20 + $0x10] sm:$0xff]   ;;  %v1574_v15 = vmov 3  }
  0x14   : > { %1379 = vmatprep.subr.bf16.mxu1 %v1505_v2  ;;  %v1507_v4 = vld [vmem:[%s362_s20] sm:$0xff]   ;;  %1491 = vset.pattern.permute.xlu1 %v1573_v5  ;;  %v1508_v6 = vld [vmem:[%s362_s20 + $0x8] sm:$0xff]   ;;  %v1511_v8 = vld [vmem:[%s2034_s4 + $0x18] sm:$0xff]   ;;  %v1575_v22 = vmov 0   ;;  %v1576_v24 = vmov 4   ;;  %v1577_v41 = vmov 1  }
  0x15   : > { %1380 = vmatpush3.bf16.msra.mxu1 %v1505_v2  ;;  %1490 = vset.pattern.permute.xlu0 %v1573_v5  ;;  %v1510_v9 = vld [vmem:[%s362_s20 + $0x18] sm:$0xff]   ;;  %v1670_v10 = vld [vmem:[%s1653_s23 + $0x10] sm:$0xff]  ;;  %v1513_v13 = vld [vmem:[%s2034_s4 + $0x8] sm:$0xff]   ;;  %vm559_vm10 = vcmask 523264   ;;  %p1331_p5 = scmp.ne.s32.totalorder %s1642_s14, 2 }
  0x16   : > { %1381 = vmatprep.subr.bf16.mxu1 %v1506_v3  ;;  %1383 = vmatprep.mubr.msk.bf16.mxu1 %vm430_vm1, %v1507_v4  ;;  %v1512_v11 = vld [vmem:[%s2034_s4 + $0x10] sm:$0xff]   ;;  %v1677_v12 = vld [vmem:[%s1653_s23 + $0x18] sm:$0xff]  ;;  %v1514_v14 = vld [vmem:[%s2034_s4] sm:$0xff]   ;;  %vm647_vm3 = vcmp.gt.f32.partialorder %v1670_v10, 0.5 }
  0x17   : > { %788 = vperm.xlu1 %1491, %v1670_v10   ;;  %v1687_v16 = vld [vmem:[%s1653_s23 + $0x8] sm:$0xff]  ;;  %v1692_v17 = vld [vmem:[%s1653_s23 + $0x20] sm:$0xff]  ;;  %v1696_v18 = vld [vmem:[%s1653_s23 + $0x30] sm:$0xff]  ;;  %v985_v25 = vsel %vm647_vm3, 1, %v1575_v22  ;;  %vm648_vm4 = vcmp.gt.f32.partialorder %v1677_v12, 0.5  ;;  %vm1055_vm3 = vcmask 15360  }
  0x18   : > { %v1699_v19 = vld [vmem:[%s1653_s23] sm:$0xff]  ;;  %v1704_v20 = vld [vmem:[%s1653_s23 + $0x38] sm:$0xff]  ;;  %v1709_v21 = vld [vmem:[%s1653_s23 + $0x28] sm:$0xff]  ;;  %v986_v26 = vsel %vm648_vm4, 1, %v1575_v22  ;;  %vm646_vm6 = vcmp.gt.f32.partialorder %v1687_v16, 0.5  ;;  %vm649_vm8 = vcmp.gt.f32.partialorder %v1692_v17, 0.5 }
  0x19   : > { %1382 = vmatpush3.bf16.msra.mxu1 %v1506_v3  ;;  %780 = vperm.xlu0 %1490, %v1699_v19   ;;  %vm645_vm2 = vcmp.gt.f32.partialorder %v1699_v19, 0.5  ;;  %vm650_vm5 = vcmp.gt.f32.partialorder %v1709_v21, 0.5  ;;  %v984_v28 = vsel %vm646_vm6, 1, %v1575_v22  ;;  %vm652_vm7 = vcmp.gt.f32.partialorder %v1704_v20, 0.5  ;;  %v901_v32 = vld [vmem:[%s2038_s8 + $0x70] sm:$0xff]  ;;  %v902_v33 = vld [vmem:[%s2038_s8 + $0x78] sm:$0xff] }
  0x1a   : > { %1391 = vmatprep.subr.bf16.mxu1 %v1511_v8  ;;  %v983_v23 = vsel %vm645_vm2, 1, %v1575_v22  ;;  %v988_v27 = vsel %vm650_vm5, 1, %v1575_v22  ;;  %v990_v29 = vsel %vm652_vm7, 1, %v1575_v22  ;;  %v987_v30 = vsel %vm649_vm8, 1, %v1575_v22  ;;  %v899_v35 = vld [vmem:[%s2038_s8 + $0x60] sm:$0xff]  ;;  %v900_v36 = vld [vmem:[%s2038_s8 + $0x68] sm:$0xff] }
  0x1b   : > { %792 = vperm.xlu1 %1491, %v1677_v12   ;;  %vm651_vm9 = vcmp.gt.f32.partialorder %v1696_v18, 0.5  ;;  %v910_v34 = vpack.c.bf16 %v902_v33, %v901_v32  ;;  %v909_v37 = vpack.c.bf16 %v900_v36, %v899_v35  ;;  %v897_v38 = vld [vmem:[%s2038_s8 + $0x50] sm:$0xff]  ;;  %v898_v39 = vld [vmem:[%s2038_s8 + $0x58] sm:$0xff]  ;;  %v895_v42 = vld [vmem:[%s2038_s8 + $0x40] sm:$0xff]  ;;  %vm1136_vm4 = vcmask 8192  }
  0x1c   : > { %1384 = vmatmul.mubr.msk.bf16.vlgmr.msra.gmra.mxu1 %vm430_vm1, %v1508_v6  ;;  %v989_v31 = vsel %vm651_vm9, 1, %v1575_v22  ;;  %v908_v40 = vpack.c.bf16 %v898_v39, %v897_v38  ;;  %v896_v43 = vld [vmem:[%s2038_s8 + $0x48] sm:$0xff]  ;;  %v1308_v47 = vld [vmem:[%s2033_s3] ss:$0 sm:$0xff] }
  0x1d   : > { %1387 = vmatprep.mubr.msk.bf16.mxu1 %vm430_vm1, %v1509_v7  ;;  %1392 = vmatpush3.bf16.msra.mxu1 %v1511_v8  ;;  %v907_v44 = vpack.c.bf16 %v896_v43, %v895_v42 }
  0x1e   : > { %1393 = vmatprep.subr.bf16.mxu1 %v1512_v11  ;;  %784 = vperm.xlu0 %1490, %v1687_v16  }
  0x1f   : > { %1492 = vset.pattern.permute.xlu1 %v1574_v15  ;;  %1407 = vmatprep.subr.bf16.mxu0 %v910_v34 }
  0x20   : > { %832 = vperm.xlu1 %1492, %v1687_v16   ;;  %1408 = vmatpush3.bf16.msra.mxu0 %v910_v34 }
  0x21   : > { %1394 = vmatpush3.bf16.msra.mxu1 %v1512_v11  ;;  %1409 = vmatprep.subr.bf16.mxu0 %v909_v37  ;;  %v894_v11 = vld [vmem:[%s2038_s8 + $0x38] sm:$0xff] }
  0x22   : > { %1395 = vmatprep.subr.bf16.mxu1 %v1513_v13  ;;  %800 = vperm.xlu0 %1490, %v1709_v21  }
  0x24   : > { %1388 = vmatmul.mubr.msk.bf16.gmra.mxu1 %vm430_vm1, %v1510_v9  ;;  %836 = vperm.xlu1 %1492, %v1670_v10  }
  0x25   : > { %1396 = vmatpush3.bf16.msra.mxu1 %v1513_v13  ;;  %1410 = vmatpush3.bf16.msra.mxu0 %v909_v37  ;;  %v891_v13 = vld [vmem:[%s2038_s8 + $0x20] sm:$0xff] }
  0x26   : > { %1397 = vmatprep.subr.bf16.mxu1 %v1514_v14  ;;  %1494 = vset.pattern.permute.xlu0 %v1574_v15 }
  0x27   : > { %828 = vperm.xlu0 %1494, %v1699_v19   ;;  %1411 = vmatprep.subr.bf16.mxu0 %v908_v40 }
  0x28   : > { %1493 = vset.pattern.permute.xlu1 %v1573_v5 }
  0x29   : > { %1398 = vmatpush3.bf16.msra.mxu1 %v1514_v14  ;;  %796 = vperm.xlu1 %1493, %v1692_v17   ;;  %v892_v14 = vld [vmem:[%s2038_s8 + $0x28] sm:$0xff] }
  0x2a   : > { %1412 = vmatpush3.bf16.msra.mxu0 %v908_v40 }
  0x2b   : > { %840 = vperm.xlu0 %1494, %v1677_v12   ;;  %1413 = vmatprep.subr.bf16.mxu0 %v907_v44 }
  0x2d   : > { %804 = vperm.xlu1 %1493, %v1696_v18  }
  0x2e   : > { %1414 = vmatpush3.bf16.msra.mxu0 %v907_v44 }
  0x2f   : > { %844 = vperm.xlu0 %1494, %v1692_v17  }
  0x31   : > { %808 = vperm.xlu1 %1493, %v1704_v20  }
  0x33   : > { %856 = vperm.xlu0 %1494, %v1704_v20  }
  0x35   : > { %1495 = vset.pattern.permute.xlu1 %v1574_v15 }
  0x36   : > { %848 = vperm.xlu1 %1495, %v1709_v21  }
  0x37   : > { %1497 = vset.pattern.permute.xlu0 %v1576_v24 }
  0x38   : > { %995 = vperm.xlu0 %1497, %v984_v28  }
  0x3a   : > { %852 = vperm.xlu1 %1495, %v1696_v18  }
  0x3c   : > { %1004 = vperm.xlu0 %1497, %v987_v30  }
  0x3e   : > { %1496 = vset.pattern.permute.xlu1 %v1576_v24 }
  0x3f   : > { %992 = vperm.xlu1 %1496, %v983_v23  }
  0x40   : > { %1010 = vperm.xlu0 %1497, %v989_v31  }
  0x43   : > { %998 = vperm.xlu1 %1496, %v985_v25  }
  0x44   : > { %1498 = vset.pattern.permute.xlu0 %v1575_v22 }
  0x45   : > { %657 = vperm.xlu0 %1498, %v1699_v19  }
  0x47   : > { %1001 = vperm.xlu1 %1496, %v986_v26  }
  0x49   : > { %1500 = vset.pattern.permute.xlu0 %v1577_v41 }
  0x4a   : > { %718 = vperm.xlu0 %1500, %v1699_v19  }
  0x4b   : > { %1007 = vperm.xlu1 %1496, %v988_v27  }
  0x4e   : > { %726 = vperm.xlu0 %1500, %v1670_v10  }
  0x4f   : > { %1013 = vperm.xlu1 %1496, %v990_v29  }
  0x52   : > { %730 = vperm.xlu0 %1500, %v1677_v12  }
  0x53   : > { %1499 = vset.pattern.permute.xlu1 %v1575_v22 }
  0x54   : > { %662 = vperm.xlu1 %1499, %v1687_v16  }
  0x56   : > { %734 = vperm.xlu0 %1500, %v1692_v17  }
  0x58   : > { %667 = vperm.xlu1 %1499, %v1670_v10   ;;  %v893_v10 = vld [vmem:[%s2038_s8 + $0x30] sm:$0xff] }
  0x5a   : > { %738 = vperm.xlu0 %1500, %v1709_v21  }
  0x5c   : > { %1501 = vset.pattern.permute.xlu1 %v1577_v41 }
  0x5d   : > { %722 = vperm.xlu1 %1501, %v1687_v16   ;;  %v905_v16 = vpack.c.bf16 %v892_v14, %v891_v13 }
  0x5e   : > { %742 = vperm.xlu0 %1500, %v1696_v18  }
  0x61   : > { %1502 = vset.pattern.permute.xlu1 %v1575_v22  ;;  %v888_v22 = vld [vmem:[%s2038_s8 + $0x8] sm:$0xff] }
  0x62   : > { %672 = vperm.xlu1 %1502, %v1677_v12   ;;  %1504 = vset.pattern.permute.xlu0 %v1576_v24  ;;  %v906_v12 = vpack.c.bf16 %v894_v11, %v893_v10 }
  0x64   : > { %1415 = vmatprep.subr.bf16.mxu0 %v906_v12 }
  0x65   : > { %1416 = vmatpush3.bf16.msra.mxu0 %v906_v12 }
  0x66   : > { %677 = vperm.xlu1 %1502, %v1692_v17   ;;  %1417 = vmatprep.subr.bf16.mxu0 %v905_v16  ;;  %v889_v17 = vld [vmem:[%s2038_s8 + $0x10] sm:$0xff] }
  0x69   : > { %1418 = vmatpush3.bf16.msra.mxu0 %v905_v16 }
  0x6a   : > { %682 = vperm.xlu1 %1502, %v1709_v21   ;;  %v887_v21 = vld [vmem:[%s2038_s8] sm:$0xff] }
  0x6b   : > { %v903_v23 = vpack.c.bf16 %v888_v22, %v887_v21 }
  0x6e   : > { %687 = vperm.xlu1 %1502, %v1696_v18   ;;  %v890_v18 = vld [vmem:[%s2038_s8 + $0x18] sm:$0xff] }
  0x6f   : > { %v904_v19 = vpack.c.bf16 %v890_v18, %v889_v17 }
  0x71   : > { %1419 = vmatprep.subr.bf16.mxu0 %v904_v19 }
  0x72   : > { %692 = vperm.xlu1 %1502, %v1704_v20   ;;  %1420 = vmatpush3.bf16.msra.mxu0 %v904_v19 }
  0x73   : > { %1421 = vmatprep.subr.bf16.mxu0 %v903_v23 }
  0x76   : > { %1503 = vset.pattern.permute.xlu1 %v1577_v41  ;;  %1422 = vmatpush3.bf16.msra.mxu0 %v903_v23 }
  0x77   : > { %746 = vperm.xlu1 %1503, %v1704_v20  }
  0x92   : > { %v789_v15 = vpop.permute.xlu1 %788 }
  0x94   : > { %v781_v28 = vpop.permute.xlu0 %780 }
  0x96   : > { %v793_v20 = vpop.permute.xlu1 %792 }
  0x99   : > { %v785_v30 = vpop.permute.xlu0 %784 }
  0x9b   : > { %v833_v24 = vpop.permute.xlu1 %832 }
  0x9d   : > { %v801_v32 = vpop.permute.xlu0 %800 }
  0x9f   : > { %v837_v25 = vpop.permute.xlu1 %836 }
  0xa2   : > { %v829_v34 = vpop.permute.xlu0 %828 }
  0xa4   : > { %v797_v26 = vpop.permute.xlu1 %796 }
  0xa6   : > { %v841_v36 = vpop.permute.xlu0 %840 }
  0xa8   : > { %v805_v27 = vpop.permute.xlu1 %804 }
  0xaa   : > { %v845_v38 = vpop.permute.xlu0 %844 }
  0xac   : > { %v809_v29 = vpop.permute.xlu1 %808 }
  0xae   : > { %v857_v40 = vpop.permute.xlu0 %856 }
  0xb1   : > { %v849_v31 = vpop.permute.xlu1 %848 }
  0xb3   : > { %v1808_v42 = vpop.permute.xlu0 %995 }
  0xb4   : > { %vm1016_vm13 = vcmp.eq.s32.totalorder %v1808_v42, 1 }
  0xb5   : > { %v853_v33 = vpop.permute.xlu1 %852 }
  0xb7   : > { %v1812_v44 = vpop.permute.xlu0 %1004 }
  0xb8   : > { %vm1019_vm15 = vcmp.eq.s32.totalorder %v1812_v44, 1 }
  0xba   : > { %v1800_v35 = vpop.permute.xlu1 %992 }
  0xbb   : > { %vm1015_vm11 = vcmp.eq.s32.totalorder %v1800_v35, 1 }
  0xbe   : > { %v1802_v37 = vpop.permute.xlu1 %998 }
  0xbf   : > { %vm1017_vm12 = vcmp.eq.s32.totalorder %v1802_v37, 1 }
  0xc2   : > { %v1804_v39 = vpop.permute.xlu1 %1001 }
  0xc3   : > { %vm1018_vm14 = vcmp.eq.s32.totalorder %v1804_v39, 1 }
  0xc6   : > { %v1806_v41 = vpop.permute.xlu1 %1007 }
  0xc7   : > { %vm1020_vm0 = vcmp.eq.s32.totalorder %v1806_v41, 1 }
  0xca   : > { %v1810_v43 = vpop.permute.xlu1 %1013 }
  0xcb   : > { %vm1022_vm2 = vcmp.eq.s32.totalorder %v1810_v43, 1 }
  0xdc   : > { %v1385_v45 = vpop.f32.mrf.mxu1 }
  0xdd   : > { %v486_v51 = vadd.f32 %v1385_v45, %v1308_v47  ;;  %v663_v45 = vpop.permute.xlu1 %662 }
  0xde   : > { %v477_v46 = vpop.f32.mrf.mxu1 }
  0xdf   : > { %v478_v49 = vadd.f32 %v1308_v47, %v477_v46  ;;  %v510_v58 = vmax.f32 %v486_v51, 0.0  ;;  %v1814_v46 = vpop.permute.xlu0 %1010 }
  0xe0   : > { %v1386_v48 = vpop.f32.mrf.mxu1  ;;  %vm1021_vm1 = vcmp.eq.s32.totalorder %v1814_v46, 1 }
  0xe1   : > { %v489_v50 = vadd.f32 %v1386_v48, %v1308_v47  ;;  %v508_v56 = vmax.f32 %v478_v49, 0.0 }
  0xe2   : > { %v480_v52 = vpop.f32.mrf.mxu1 }
  0xe3   : > { %v481_v53 = vadd.f32 %v1308_v47, %v480_v52  ;;  %v511_v54 = vmax.f32 %v489_v50, 0.0  ;;  %v658_v48 = vpop.permute.xlu0 %657 }
  0xe4   : > { %v1389_v55 = vpop.f32.mrf.mxu1 }
  0xe5   : > { %v509_v57 = vmax.f32 %v481_v53, 0.0  ;;  %v517_v61 = vpack.c.bf16 %v511_v54, %v510_v58  ;;  %v502_v1 = vadd.f32 %v1389_v55, %v1308_v47  ;;  %v1824_v58 = vld [vmem:[%s2037_s7] ss:$0 sm:$0xff] }
  0xe6   : > { %v493_v59 = vpop.f32.mrf.mxu1  ;;  %v1855_v12 = vmul.f32 %v1824_v58, %v849_v31  ;;  %v1858_v13 = vmul.f32 %v1824_v58, %v853_v33  ;;  %v859_v14 = vmul.f32 %v1824_v58, %v829_v34  ;;  %v1866_v21 = vmul.f32 %v1824_v58, %v845_v38 }
  0xe7   : > { %v516_v60 = vpack.c.bf16 %v509_v57, %v508_v56  ;;  %v494_v63 = vadd.f32 %v1308_v47, %v493_v59  ;;  %v514_v7 = vmax.f32 %v502_v1, 0.0  ;;  %v719_v50 = vpop.permute.xlu0 %718  ;;  %v1819_v56 = vld [vmem:[%s2036_s6] ss:$0 sm:$0xff]  ;;  %v1869_v22 = vmul.f32 %v1824_v58, %v857_v40 }
  0xe8   : > { %v1390_v62 = vpop.f32.mrf.mxu1  ;;  %v1838_v1 = vmul.f32 %v1819_v56, %v797_v26  ;;  %v755_v17 = vmul.f32 %v1824_v58, %v719_v50  ;;  %v702_v23 = vmul.f32 %v1819_v56, %v663_v45 }
  0xe9   : > { %v505_v0 = vadd.f32 %v1390_v62, %v1308_v47  ;;  %1399 = vmatprep.mubr.msk.bf16.mxu1 %vm559_vm10, %v516_v60  ;;  %v512_v5 = vmax.f32 %v494_v63, 0.0  ;;  %v813_v60 = vmul.f32 %v1819_v56, %v789_v15  ;;  %v814_v62 = vmul.f32 %v1819_v56, %v793_v20 }
  0xea   : > { %v496_v2 = vpop.f32.mrf.mxu1  ;;  %1400 = vmatmul.mubr.msk.bf16.vlgmr.msra.gmra.mxu1 %vm559_vm10, %v517_v61  ;;  %v1830_v61 = vld [vmem:[%s2035_s5] ss:$0 sm:$0xff]  ;;  %v1834_v63 = vmul.f32 %v1824_v58, %v833_v24  ;;  %v862_v15 = vmul.f32 %v1824_v58, %v841_v36 }
  0xeb   : > { %v497_v3 = vadd.f32 %v1308_v47, %v496_v2  ;;  %v515_v4 = vmax.f32 %v505_v0, 0.0  ;;  %v668_v47 = vpop.permute.xlu1 %667  ;;  %v727_v52 = vpop.permute.xlu0 %726  ;;  %v861_v0 = vmul.f32 %v1824_v58, %v837_v25  ;;  %v1841_v2 = vmul.f32 %v1819_v56, %v805_v27 }
  0xec   : > { %v757_v26 = vmul.f32 %v1824_v58, %v727_v52 }
  0xed   : > { %v513_v6 = vmax.f32 %v497_v3, 0.0  ;;  %v519_v9 = vpack.c.bf16 %v515_v4, %v514_v7  ;;  %v811_v3 = vmul.f32 %v1819_v56, %v781_v28  ;;  %v1845_v4 = vmul.f32 %v1819_v56, %v809_v29 }
  0xee   : > { %v1849_v7 = vmul.f32 %v1819_v56, %v801_v32 }
  0xef   : > { %v518_v8 = vpack.c.bf16 %v513_v6, %v512_v5  ;;  %v723_v49 = vpop.permute.xlu1 %722  ;;  %v731_v54 = vpop.permute.xlu0 %730  ;;  %v812_v5 = vmul.f32 %v1819_v56, %v785_v30 }
  0xf0   : > { %v756_v30 = vmul.f32 %v1824_v58, %v723_v49  ;;  %v758_v31 = vmul.f32 %v1824_v58, %v731_v54 }
  0xf1   : > { %1403 = vmatprep.mubr.msk.bf16.mxu1 %vm559_vm10, %v518_v8  ;;  %v701_v8 = vmul.f32 %v1819_v56, %v658_v48 }
  0xf2   : > { %1404 = vmatmul.mubr.msk.bf16.gmra.mxu1 %vm559_vm10, %v519_v9  ;;  %v703_v9 = vmul.f32 %v1819_v56, %v668_v47 }
  0xf3   : > { %v673_v51 = vpop.permute.xlu1 %672  ;;  %v735_v57 = vpop.permute.xlu0 %734 }
  0xf4   : > { %v704_v24 = vmul.f32 %v1819_v56, %v673_v51  ;;  %v759_v36 = vmul.f32 %v1824_v58, %v735_v57 }
  0xf7   : > { %v678_v53 = vpop.permute.xlu1 %677  ;;  %v739_v11 = vpop.permute.xlu0 %738 }
  0xf8   : > { %v705_v34 = vmul.f32 %v1819_v56, %v678_v53 }
  0xfb   : > { %v683_v55 = vpop.permute.xlu1 %682  ;;  %v743_v45 = vpop.permute.xlu0 %742 }
  0xfc   : > { %v706_v47 = vmul.f32 %v1819_v56, %v683_v55 }
  0xff   : > { %v688_v59 = vpop.permute.xlu1 %687 }
 0x100   : > { %v707_v54 = vmul.f32 %v1819_v56, %v688_v59 }
 0x103   : > { %v693_v20 = vpop.permute.xlu1 %692 }
 0x1aa   : > { %v1401_v6 = vpop.f32.mrf.mxu1 }
 0x1ab   : > { %v615_v10 = vadd.f32 %v1401_v6, %v1830_v61  ;;  %v747_v6 = vpop.permute.xlu1 %746 }
 0x1ac   : > { %v606_v16 = vpop.f32.mrf.mxu1 }
 0x1ad   : > { %v821_v18 = vadd.f32 %v813_v60, %v615_v10  ;;  %v607_v19 = vadd.f32 %v1830_v61, %v606_v16  ;;  %v711_v27 = vadd.f32 %v703_v9, %v615_v10  ;;  %v761_v9 = vmul.f32 %v1824_v58, %v743_v45 }
 0x1ae   : > { %v1402_v25 = vpop.f32.mrf.mxu1 }
 0x1af   : > { %v1874_v28 = vadd.f32 %v861_v0, %v821_v18  ;;  %v709_v29 = vadd.f32 %v701_v8, %v607_v19  ;;  %v618_v32 = vadd.f32 %v1402_v25, %v1830_v61  ;;  %v819_v48 = vadd.f32 %v811_v3, %v607_v19 }
 0x1b0   : > { %v609_v33 = vpop.f32.mrf.mxu1  ;;  %v765_v52 = vadd.f32 %v757_v26, %v711_v27  ;;  %v760_v8 = vmul.f32 %v1824_v58, %v739_v11  ;;  %v762_v18 = vmul.f32 %v1824_v58, %v747_v6 }
 0x1b1   : > { %v763_v38 = vadd.f32 %v755_v17, %v709_v29  ;;  %v610_v40 = vadd.f32 %v1830_v61, %v609_v33  ;;  %v712_v50 = vadd.f32 %v704_v24, %v618_v32  ;;  %v822_v49 = vadd.f32 %v814_v62, %v618_v32 }
 0x1b2   : > { %v1405_v51 = vpop.f32.mrf.mxu1  ;;  %v867_v19 = vadd.f32 %v859_v14, %v819_v48  ;;  %v877_v26 = vmax.f32 %v1874_v28, 0.0 }
 0x1b3   : > { %v710_v60 = vadd.f32 %v702_v23, %v610_v40  ;;  %v820_v0 = vadd.f32 %v812_v5, %v610_v40  ;;  %v771_v53 = vmax.f32 %v763_v38, 0.0  ;;  %v766_v57 = vadd.f32 %v758_v31, %v712_v50 }
 0x1b4   : > { %v622_v10 = vpop.f32.mrf.mxu1  ;;  %v631_v3 = vadd.f32 %v1405_v51, %v1830_v61  ;;  %v870_v59 = vadd.f32 %v862_v15, %v822_v49  ;;  %v708_v5 = vmul.f32 %v1819_v56, %v693_v20  ;;  %v773_v23 = vmax.f32 %v765_v52, 0.0 }
 0x1b5   : > { %v764_v55 = vadd.f32 %v756_v30, %v710_v60  ;;  %v623_v62 = vadd.f32 %v1830_v61, %v622_v10  ;;  %v868_v16 = vadd.f32 %v1834_v63, %v820_v0  ;;  %v1023_v27 = vsel %vm1015_vm11, %v771_v53, 0.0 }
 0x1b6   : > { %v1406_v17 = vpop.f32.mrf.mxu1  ;;  %v774_v29 = vmax.f32 %v766_v57, 0.0  ;;  %v715_v15 = vadd.f32 %v707_v54, %v631_v3  ;;  %v878_v14 = vmax.f32 %v870_v59, 0.0  ;;  %v875_v33 = vmax.f32 %v867_v19, 0.0 }
 0x1b7   : > { %v772_v24 = vmax.f32 %v764_v55, 0.0  ;;  %v713_v11 = vadd.f32 %v705_v34, %v623_v62  ;;  %v634_v25 = vadd.f32 %v1406_v17, %v1830_v61  ;;  %v876_v63 = vmax.f32 %v868_v16, 0.0 }
 0x1b8   : > { %v625_v30 = vpop.f32.mrf.mxu1  ;;  %v823_v58 = vadd.f32 %v1838_v1, %v623_v62  ;;  %v1025_v28 = vsel %vm1017_vm12, %v773_v23, 0.0  ;;  %v1026_v45 = vsel %vm1018_vm14, %v774_v29, 0.0  ;;  %v769_v1 = vadd.f32 %v761_v9, %v715_v15 }
 0x1b9   : > { %v1024_v56 = vsel %vm1016_vm13, %v772_v24, 0.0  ;;  %v767_v20 = vadd.f32 %v759_v36, %v713_v11  ;;  %v826_v32 = vadd.f32 %v1845_v4, %v634_v25  ;;  %v716_v38 = vadd.f32 %v708_v5, %v634_v25  ;;  %v1039_v11 = vld [vmem:[#allocation2] sm:$0x1] }
 0x1ba   : > { %v1040_v31 = vadd.f32 %v1024_v56, %v1023_v27  ;;  %v626_v40 = vadd.f32 %v1830_v61, %v625_v30  ;;  %v825_v36 = vadd.f32 %v1841_v2, %v631_v3  ;;  %v883_v50 = vpack.c.bf16 %v876_v63, %v875_v33  ;;  %v1330_v56 = vld [vmem:[%s2039_s9] ss:$0 sm:$0xff] }
 0x1bb   : > { %v775_v34 = vmax.f32 %v767_v20, 0.0  ;;  %v871_v49 = vadd.f32 %v1866_v21, %v823_v58  ;;  %v874_v54 = vadd.f32 %v1869_v22, %v826_v32  ;;  %v884_v60 = vpack.c.bf16 %v878_v14, %v877_v26 }
 0x1bc   : > { %v1041_v48 = vadd.f32 %v1040_v31, %v1025_v28  ;;  %v714_v51 = vadd.f32 %v706_v47, %v626_v40  ;;  %v824_v4 = vadd.f32 %v1849_v7, %v626_v40  ;;  %1423 = vmatprep.mubr.bf16.mxu0 %v883_v50  ;;  %v770_v0 = vadd.f32 %v762_v18, %v716_v38 }
 0x1bd   : > { %v1027_v61 = vsel %vm1019_vm15, %v775_v34, 0.0  ;;  %v873_v2 = vadd.f32 %v1858_v13, %v825_v36  ;;  %1424 = vmatmul.mubr.bf16.vlgmr.msra.gmra.mxu0 %v884_v60  ;;  %v777_v47 = vmax.f32 %v769_v1, 0.0  ;;  %v879_v7 = vmax.f32 %v871_v49, 0.0 }
 0x1be   : > { %v1042_v52 = vadd.f32 %v1041_v48, %v1026_v45  ;;  %v768_v6 = vadd.f32 %v760_v8, %v714_v51  ;;  %v872_v53 = vadd.f32 %v1855_v12, %v824_v4  ;;  %v882_v22 = vmax.f32 %v874_v54, 0.0 }
 0x1bf   : > { %v778_v10 = vmax.f32 %v770_v0, 0.0  ;;  %v881_v12 = vmax.f32 %v873_v2, 0.0  ;;  %v1029_v13 = vsel %vm1021_vm1, %v777_v47, 0.0 }
 0x1c0   : > { %v1043_v21 = vadd.f32 %v1042_v52, %v1027_v61  ;;  %v776_v57 = vmax.f32 %v768_v6, 0.0  ;;  %v880_v9 = vmax.f32 %v872_v53, 0.0 }
 0x1c1   : > { %v886_v16 = vpack.c.bf16 %v882_v22, %v881_v12  ;;  %v1030_v59 = vsel %vm1022_vm2, %v778_v10, 0.0 }
 0x1c2   : > { %v1028_v55 = vsel %vm1020_vm0, %v776_v57, 0.0  ;;  %v885_v8 = vpack.c.bf16 %v880_v9, %v879_v7  ;;  %v1085_v57 = vlaneseq }
 0x1c3   : > { %v1044_v3 = vadd.f32 %v1043_v21, %v1028_v55  ;;  %v1077_v55 = vld [vmem:[#allocation3] sm:$0x1] }
 0x1c4   : > { %1427 = vmatprep.mubr.bf16.mxu0 %v885_v8  ;;  %v1086_v22 = vshrl.u32 %v1085_v57, 7 }
 0x1c5   : > { %v1045_v62 = vadd.f32 %v1044_v3, %v1029_v13  ;;  %1428 = vmatmul.mubr.bf16.gmra.mxu0 %v886_v16 }
 0x1c6   : > { %v1087_v12 = vsub.s32 0, %v1086_v22 }
 0x1c7   : > { %v1046_v5 = vadd.f32 %v1045_v62, %v1030_v59 }
 0x1c9   : > { %v1047_v17 = vrot.slane %v1046_v5, 4 }
 0x1cb   : > { %v1048_v18 = vadd.f32 %v1047_v17, %v1046_v5 }
 0x1cd   : > { %v1049_v19 = vrot.slane %v1048_v18, 2 }
 0x1cf   : > { %v1050_v23 = vadd.f32 %v1049_v19, %v1048_v18 }
 0x1d1   : > { %v1051_v24 = vrot.slane %v1050_v23, 1 }
 0x1d3   : > { %v1052_v25 = vadd.f32 %v1051_v24, %v1050_v23 }
 0x1d5   : > { %v1053_v26 = vadd.f32 %v1052_v25, %v1039_v11 }
 0x1d7   : > { %1054 = vst [vmem:[#allocation2] sm:$0x1] %v1053_v26 }
 0x27d   : > { %v1425_v27 = vpop.f32.mrf.mxu0 }
 0x27e   : > { %v961_v14 = vadd.f32 %v1425_v27, %v1330_v56 }
 0x27f   : > { %v952_v29 = vpop.f32.mrf.mxu0 }
 0x280   : > { %v953_v32 = vadd.f32 %v1330_v56, %v952_v29  ;;  %v1033_v36 = vsel %vm1017_vm12, %v961_v14, -1e+30 }
 0x281   : > { %v1426_v30 = vpop.f32.mrf.mxu0  ;;  %v1058_v54 = vsel %vm1055_vm3, %v1033_v36, -inf }
 0x282   : > { %v964_v20 = vadd.f32 %v1426_v30, %v1330_v56  ;;  %v1031_v1 = vsel %vm1015_vm11, %v953_v32, -1e+30 }
 0x283   : > { %v955_v63 = vpop.f32.mrf.mxu0  ;;  %v1056_v42 = vsel %vm1055_vm3, %v1031_v1, -inf }
 0x284   : > { %v956_v33 = vadd.f32 %v1330_v56, %v955_v63  ;;  %v1034_v38 = vsel %vm1018_vm14, %v964_v20, -1e+30 }
 0x285   : > { %v1429_v15 = vpop.f32.mrf.mxu0  ;;  %v1059_v51 = vsel %vm1055_vm3, %v1034_v38, -inf }
 0x286   : > { %v977_v58 = vadd.f32 %v1429_v15, %v1330_v56  ;;  %v1032_v49 = vsel %vm1016_vm13, %v956_v33, -1e+30 }
 0x287   : > { %v968_v31 = vpop.f32.mrf.mxu0  ;;  %v1057_v43 = vsel %vm1055_vm3, %v1032_v49, -inf }
 0x288   : > { %v969_v28 = vadd.f32 %v1330_v56, %v968_v31  ;;  %v1037_v40 = vsel %vm1021_vm1, %v977_v58, -1e+30 }
 0x289   : > { %v1430_v34 = vpop.f32.mrf.mxu0  ;;  %v1064_v44 = vsel %vm1055_vm3, %v1037_v40, -inf }
 0x28a   : > { %v1035_v45 = vsel %vm1019_vm15, %v969_v28, -1e+30  ;;  %v980_v48 = vadd.f32 %v1430_v34, %v1330_v56  ;;  %v1065_v61 = vmax.f32 %v1058_v54, %v1064_v44 }
 0x28b   : > { %v971_v50 = vpop.f32.mrf.mxu0  ;;  %v1060_v4 = vsel %vm1055_vm3, %v1035_v45, -inf }
 0x28c   : > { %v1038_v39 = vsel %vm1022_vm2, %v980_v48, -1e+30  ;;  %v972_v46 = vadd.f32 %v1330_v56, %v971_v50  ;;  %v1061_v0 = vmax.f32 %v1056_v42, %v1060_v4 }
 0x28d   : > { %v1066_v37 = vsel %vm1055_vm3, %v1038_v39, -inf }
 0x28e   : > { %v1067_v52 = vmax.f32 %v1059_v51, %v1066_v37  ;;  %v1036_v35 = vsel %vm1020_vm0, %v972_v46, -1e+30 }
 0x28f   : > { %v1062_v60 = vsel %vm1055_vm3, %v1036_v35, -inf }
 0x290   : > { %v1063_v6 = vmax.f32 %v1057_v43, %v1062_v60  ;;  %v1069_v53 = vmax.f32 %v1065_v61, %v1067_v52  ;;  %v1079_v61 = vld [vmem:[#allocation4] sm:$0x1] }
 0x292   : > { %v1068_v2 = vmax.f32 %v1061_v0, %v1063_v6 }
 0x294   : > { %v1070_v21 = vmax.f32 %v1068_v2, %v1069_v53 }
 0x296   : > { %v1071_v47 = vrot.slane %v1070_v21, 4 }
 0x298   : > { %v1072_v7 = vmax.f32 %v1070_v21, %v1071_v47 }
 0x29a   : > { %v1073_v9 = vrot.slane %v1072_v7, 2 }
 0x29c   : > { %v1074_v41 = vmax.f32 %v1072_v7, %v1073_v9 }
 0x29e   : > { %v1075_v10 = vrot.slane %v1074_v41, 1 }
 0x2a0   : > { %v1076_v8 = vmax.f32 %v1074_v41, %v1075_v10 }
 0x2a2   : > { %v1078_v3 = vmax.f32 %v1077_v55, %v1076_v8 }
 0x2a4   : > { %v1088_v13 = vrot.slane %v1078_v3, %v1087_v12  ;;  %1138 = vst.msk [vmem:[#allocation3] sm:$0x1] %vm1136_vm4, %v1078_v3  ;;  %v1080_v32 = vsub.f32 %v1077_v55, %v1078_v3 }
 0x2a6   : > { %v1090_v62 = vsub.f32 %v1031_v1, %v1088_v13  ;;  %v1091_v16 = vsub.f32 %v1032_v49, %v1088_v13  ;;  %v1092_v59 = vsub.f32 %v1033_v36, %v1088_v13  ;;  %v1093_v5 = vsub.f32 %v1034_v38, %v1088_v13 }
 0x2a7   : > { %v1094_v17 = vsub.f32 %v1035_v45, %v1088_v13  ;;  %v1095_v23 = vsub.f32 %v1036_v35, %v1088_v13  ;;  %v1096_v25 = vsub.f32 %v1037_v40, %v1088_v13  ;;  %v1097_v27 = vsub.f32 %v1038_v39, %v1088_v13 }
 0x2a8   : > { %v1098_v18 = vmul.f32 1.442695, %v1090_v62  ;;  %v1100_v19 = vmul.f32 1.442695, %v1091_v16  ;;  %v1102_v24 = vmul.f32 1.442695, %v1092_v59 }
 0x2a9   : > { %v1104_v11 = vmul.f32 1.442695, %v1093_v5  ;;  %v1106_v26 = vmul.f32 1.442695, %v1094_v17  ;;  %v1108_v29 = vmul.f32 1.442695, %v1095_v23 }
 0x2aa   : > { %1515 = vpow2.f32 %v1098_v18  ;;  %v1110_v30 = vmul.f32 1.442695, %v1096_v25  ;;  %v1112_v63 = vmul.f32 1.442695, %v1097_v27  ;;  %v1081_v48 = vmul.f32 1.442695, %v1080_v32 }
 0x2ab   : > { %1517 = vpow2.f32 %v1100_v19 }
 0x2ac   : > { %1519 = vpow2.f32 %v1102_v24 }
 0x2ad   : > { %1521 = vpow2.f32 %v1104_v11 }
 0x2ae   : > { %1523 = vpow2.f32 %v1106_v26 }
 0x2af   : > { %1525 = vpow2.f32 %v1108_v29 }
 0x2b0   : > { %1527 = vpow2.f32 %v1110_v30 }
 0x2b1   : > { %1529 = vpow2.f32 %v1112_v63 }
 0x2b2   : > { %1531 = vpow2.f32 %v1081_v48 }
 0x2b7   : > { %v1516_v56 = vpop.eup %1515 }
 0x2b8   : > { %v1518_v15 = vpop.eup %1517  ;;  %v1114_v20 = vsel %vm1055_vm3, %v1516_v56, 0.0 }
 0x2b9   : > { %v1520_v58 = vpop.eup %1519  ;;  %v1115_v14 = vsel %vm1055_vm3, %v1518_v15, 0.0 }
 0x2ba   : > { %v1522_v31 = vpop.eup %1521  ;;  %v1116_v33 = vadd.f32 %v1115_v14, %v1114_v20  ;;  %v1117_v28 = vsel %vm1055_vm3, %v1520_v58, 0.0 }
 0x2bb   : > { %v1524_v34 = vpop.eup %1523  ;;  %v1119_v40 = vsel %vm1055_vm3, %v1522_v31, 0.0 }
 0x2bc   : > { %v1118_v38 = vadd.f32 %v1117_v28, %v1116_v33  ;;  %v1526_v45 = vpop.eup %1525  ;;  %v1121_v50 = vsel %vm1055_vm3, %v1524_v34, 0.0 }
 0x2bd   : > { %v1528_v1 = vpop.eup %1527  ;;  %v1123_v39 = vsel %vm1055_vm3, %v1526_v45, 0.0 }
 0x2be   : > { %v1120_v36 = vadd.f32 %v1119_v40, %v1118_v38  ;;  %v1530_v46 = vpop.eup %1529  ;;  %v1125_v44 = vsel %vm1055_vm3, %v1528_v1, 0.0 }
 0x2bf   : > { %v1127_v37 = vsel %vm1055_vm3, %v1530_v46, 0.0  ;;  %v1532_v60 = vpop.eup %1531 }
 0x2c0   : > { %v1122_v49 = vadd.f32 %v1121_v50, %v1120_v36  ;;  %v1083_v6 = vmul.f32 %v1532_v60, %v1079_v61 }
 0x2c2   : > { %v1124_v51 = vadd.f32 %v1123_v39, %v1122_v49 }
 0x2c4   : > { %v1126_v4 = vadd.f32 %v1125_v44, %v1124_v51 }
 0x2c6   : > { %v1128_v52 = vadd.f32 %v1127_v37, %v1126_v4 }
 0x2c8   : > { %v1129_v35 = vrot.slane %v1128_v52, 4 }
 0x2ca   : > { %v1130_v54 = vadd.f32 %v1129_v35, %v1128_v52 }
 0x2cc   : > { %v1131_v42 = vrot.slane %v1130_v54, 2 }
 0x2ce   : > { %v1132_v43 = vadd.f32 %v1131_v42, %v1130_v54 }
 0x2d0   : > { %v1133_v0 = vrot.slane %v1132_v43, 1 }
 0x2d2   : > { %v1134_v53 = vadd.f32 %v1133_v0, %v1132_v43  ;;  %1142 = sbr.rel (%p1331_p5) target bundleno = 960 (0x3c0), region = 68 }
 0x2d4   : > { %v1135_v2 = vadd.f32 %v1134_v53, %v1083_v6 }
 0x2d6   : > { %1137 = vst.msk [vmem:[#allocation4] sm:$0x1] %vm1136_vm4, %v1135_v2 }
 0x2d7   : > { %v1160_v21 = vld [vmem:[%s2038_s8 + $0x78] sm:$0xff]  ;;  %v1578_v47 = vmov 0.0   ;;  %v1159_v7 = vld [vmem:[%s2038_s8 + $0x70] sm:$0xff]  ;;  %vm1579_vm5 = vmmov 0   ;;  %v1158_v57 = vld [vmem:[%s2038_s8 + $0x68] sm:$0xff] }
 0x2d8   : > { %1431 = vmatprep.subr.mxu0 %v1578_v47  ;;  %1463 = vmatprep.mubr.msk.f32.mxu0 %vm1579_vm5, %v1578_v47  ;;  %v1157_v9 = vld [vmem:[%s2038_s8 + $0x60] sm:$0xff]  ;;  %v1156_v41 = vld [vmem:[%s2038_s8 + $0x58] sm:$0xff]  ;;  %v1155_v22 = vld [vmem:[%s2038_s8 + $0x50] sm:$0xff] }
 0x2d9   : > { %1432 = vmatpush3.msra.mxu0 %v1160_v21  ;;  %v1154_v10 = vld [vmem:[%s2038_s8 + $0x48] sm:$0xff]  ;;  %v1153_v55 = vld [vmem:[%s2038_s8 + $0x40] sm:$0xff]  ;;  %v1152_v8 = vld [vmem:[%s2038_s8 + $0x38] sm:$0xff] }
 0x2da   : > { %1433 = vmatprep.subr.mxu0 %v1578_v47  ;;  %v1151_v12 = vld [vmem:[%s2038_s8 + $0x30] sm:$0xff]  ;;  %v1150_v3 = vld [vmem:[%s2038_s8 + $0x28] sm:$0xff]  ;;  %v1149_v13 = vld [vmem:[%s2038_s8 + $0x20] sm:$0xff] }
 0x2db   : > { %1434 = vmatpush3.msra.mxu0 %v1159_v7  ;;  %v1148_v62 = vld [vmem:[%s2038_s8 + $0x18] sm:$0xff]  ;;  %v1147_v16 = vld [vmem:[%s2038_s8 + $0x10] sm:$0xff]  ;;  %v1143_v59 = vld [vmem:[#allocation2] sm:$0x1] }
 0x2dc   : > { %1435 = vmatprep.subr.mxu0 %v1578_v47  ;;  %v1146_v5 = vld [vmem:[%s2038_s8 + $0x8] sm:$0xff]  ;;  %v1145_v17 = vld [vmem:[%s2038_s8] sm:$0xff]  ;;  %v1144_v18 = vmul.f32 0.0076923077, %v1143_v59 }
 0x2dd   : > { %1436 = vmatpush3.msra.mxu0 %v1158_v57  ;;  %v1232_v19 = vld [vmem:[#allocation4] sm:$0x1]  ;;  %v1236_v25 = vld [vmem:[#allocation3] sm:$0x1]  ;;  %v1161_v26 = vld [vmem:[%s2039_s9] sm:$0x1] }
 0x2de   : > { %1437 = vmatprep.subr.mxu0 %v1578_v47  ;;  %v1233_v23 = vmul.f32 0.0076923077, %v1232_v19 }
 0x2df   : > { %1438 = vmatpush3.msra.mxu0 %v1157_v9 }
 0x2e0   : > { %1439 = vmatprep.subr.mxu0 %v1578_v47  ;;  %1533 = vlog2.f32 %v1233_v23 }
 0x2e1   : > { %1440 = vmatpush3.msra.mxu0 %v1156_v41 }
 0x2e2   : > { %1441 = vmatprep.subr.mxu0 %v1578_v47 }
 0x2e3   : > { %1442 = vmatpush3.msra.mxu0 %v1155_v22 }
 0x2e4   : > { %1443 = vmatprep.subr.mxu0 %v1578_v47 }
 0x2e5   : > { %1444 = vmatpush3.msra.mxu0 %v1154_v10 }
 0x2e6   : > { %1445 = vmatprep.subr.mxu0 %v1578_v47 }
 0x2e7   : > { %1446 = vmatpush3.msra.mxu0 %v1153_v55 }
 0x2e8   : > { %1447 = vmatprep.subr.mxu0 %v1578_v47 }
 0x2e9   : > { %1448 = vmatpush3.msra.mxu0 %v1152_v8 }
 0x2ea   : > { %1449 = vmatprep.subr.mxu0 %v1578_v47 }
 0x2eb   : > { %1450 = vmatpush3.msra.mxu0 %v1151_v12 }
 0x2ec   : > { %1451 = vmatprep.subr.mxu0 %v1578_v47 }
 0x2ed   : > { %1452 = vmatpush3.msra.mxu0 %v1150_v3  ;;  %v1534_v24 = vpop.eup %1533 }
 0x2ee   : > { %1453 = vmatprep.subr.mxu0 %v1578_v47  ;;  %v1235_v11 = vmul.f32 0.6931472, %v1534_v24 }
 0x2ef   : > { %1454 = vmatpush3.msra.mxu0 %v1149_v13 }
 0x2f0   : > { %1455 = vmatprep.subr.mxu0 %v1578_v47  ;;  %v1237_v27 = vadd.f32 %v1236_v25, %v1235_v11 }
 0x2f1   : > { %1456 = vmatpush3.msra.mxu0 %v1148_v62 }
 0x2f2   : > { %1457 = vmatprep.subr.mxu0 %v1578_v47 }
 0x2f3   : > { %1458 = vmatpush3.msra.mxu0 %v1147_v16 }
 0x2f4   : > { %1459 = vmatprep.subr.mxu0 %v1578_v47 }
 0x2f5   : > { %1460 = vmatpush3.msra.mxu0 %v1146_v5 }
 0x2f6   : > { %1461 = vmatprep.subr.mxu0 %v1578_v47 }
 0x2f7   : > { %1462 = vmatpush3.msra.mxu0 %v1145_v17 }
 0x2f8   : > { %1464 = vmatmul.mubr.f32.vlgmr.msra.gmra.mxu0 %v1144_v18 }
 0x3b8   : > { %v1228_v29 = vpop.f32.mrf.mxu0 }
 0x3b9   : > { %v1229_v30 = vadd.f32 %v1228_v29, %v1161_v26 }
 0x3ba   : > { %v1465_v63 = vpop.f32.mrf.mxu0 }
 0x3bb   : > { %v1238_v56 = vsub.f32 %v1229_v30, %v1237_v27 }
 0x3bd   : > { %v1239_v15 = vsub.f32 0.0, %v1238_v56 }
 0x3bf   : > { %1240 = vst.msk [vmem:[#allocation5] sm:$0x1] %vm1136_vm4, %v1239_v15 }
 0x3c0 PF: > { %p1470_p6 = scmp.eq.s32.totalorder %s1642_s14, 2  ;;  %s1580_s22 = smov [#allocation5]  }
 0x3c1   : > { %s1248_s23 = sshll.u32 %s1580_s22, 4  ;;  %s1249_s23 = int_to_ptr.vmem [resolvable:$true] %s1248_s23 }
 0x3c2   : > { %s1535_s24 = scalar_lea.vmem %s1249_s23, 16  ;;  %s1541_s25 = scalar_lea.vmem %s1249_s23, 32 }
 0x3c3   : > { %p1536_p7 = scmp.ne.s32.totalorder %s1249_s23, %s1535_s24  ;;  %p1542_p10 = scmp.lt.s32.totalorder %s1249_s23, %s1249_s23 }
 0x3c4   : > { %p1543_p11 = scmp.lt.s32.totalorder %s1541_s25, %s1535_s24 }
 0x3c5   : > { %p1537_p8 = pnand %p1536_p7, %p1470_p6 }
 0x3c6   : > { %p1544_p12 = por %p1543_p11, %p1542_p10 }
 0x3c7   : > { %p1538_p9 = pneg %p1537_p8 }
 0x3c9   : > { %p1545_p13 = pnand %p1544_p12, %p1538_p9 }
 0x3cb   : > { %1548 = shalt.err (!%p1545_p13)
}
 0x3cc   : > { %1467 = dma.vmem_to_hbm [thread:$0]  (%p1470_p6), %s1249_s23, 16, %s2040_s10, [#allocation6]  }
 0x3cd   : > { %1564 = dma.done.wait (%p1470_p6), [#allocation6], 16  }
 0x3ce   : > { %1566 = vsyncadd (%p1470_p6), [#allocation6], 4294967280 }
 0x3cf PF: > { %s21_s13 = sadd.s32 1, %s1569_s13  }
 0x3d0   : > { %p18_p0 = scmp.ge.s32.totalorder %s21_s13, 5  }
 0x3d2   :  { %20 = sbr.rel (!%p18_p0) target bundleno = 1 (0x1), region = 98 }
 0x3d7   :  { %1261 = vsyncpa [#allocation6], 1 }
 0x3d8   :  { %1263 = vsyncpa [#allocation6 + $0x1], 1 }

</bundles_post_ra>
